<compile_context>
chip_gen: v7x
topology: tpu7x:2x2x1
jax: 0.10.0
libtpu: 0.0.40
codegen_flags: <defaults>
</compile_context>

<pallas_src>
import functools
import math

import jax
import jax.numpy as jnp
from jax.experimental import pallas as pl
from jax.experimental.pallas import tpu as pltpu

NEG_SLOPE = 0.01        # F.leaky_relu default negative_slope
LANE = 128              # TPU lane width; all feature/class dims padded to this
NEG_FILL = -1e30        # effective -inf for padded class logits (finite -> no NaNs)


def _round_up(x, m):
    return (x + m - 1) // m * m


def _nbytes(x):
    return math.prod(x.shape) * x.dtype.itemsize


def _gcn_layer_kernel(a_ref, h_ref, w_ref, b_ref, *rest, apply_mask, final):
    """One GCN layer on a (tm, N_pad) row tile of A_hat.

    z = (A_tile @ H) @ W + b   with bf16 A/H on the MXU, f32 accumulation,
    followed by leaky_relu + dropout mask (layers 1/2) or log_softmax (layer 3).
    """
    if apply_mask:
        mask_ref, out_ref = rest
    else:
        (out_ref,) = rest

    # Dominant N^2 matmul: bf16 x bf16 -> f32 accumulate.
    agg = jnp.dot(a_ref[...], h_ref[...], preferred_element_type=jnp.float32)
    z = jnp.dot(agg, w_ref[...], preferred_element_type=jnp.float32) + b_ref[...]

    if final:
        # log_softmax along the (lane-dense, padded) class axis; padded columns
        # carry -1e30 bias so they never win the max and exp() underflows to 0.
        m = jnp.max(z, axis=-1, keepdims=True)
        lse = m + jnp.log(jnp.sum(jnp.exp(z - m), axis=-1, keepdims=True))
        out_ref[...] = z - lse
    else:
        z = jnp.maximum(z, NEG_SLOPE * z)          # leaky_relu: 1 vmul + 1 vmax
        if apply_mask:
            z = z * mask_ref[...]                  # dropout: pre-scaled keep mask
        out_ref[...] = z


def _gcn_layer(a_bf16, h_bf16, w, b, mask=None, *, final=False, tm=128):
    n_pad = a_bf16.shape[0]
    f_in = h_bf16.shape[1]
    f_out = w.shape[1]
    assert n_pad % tm == 0
    grid = (n_pad // tm,)

    in_specs = [
        pl.BlockSpec((tm, n_pad), lambda i: (i, 0)),     # A_hat row tile (streamed)
        pl.BlockSpec((n_pad, f_in), lambda i: (0, 0)),   # H resident in VMEM
        pl.BlockSpec((f_in, f_out), lambda i: (0, 0)),   # W resident
        pl.BlockSpec((1, f_out), lambda i: (0, 0)),      # bias resident
    ]
    args = [a_bf16, h_bf16, w, b]
    if mask is not None:
        in_specs.append(pl.BlockSpec((tm, f_out), lambda i: (i, 0)))
        args.append(mask)

    out_spec = pl.BlockSpec((tm, f_out), lambda i: (i, 0))  # lane-dense output

    # VMEM budget: double-buffered streamed blocks + resident operands + slack.
    streamed = tm * n_pad * 2 + tm * f_out * 4 + (tm * f_out * 4 if mask is not None else 0)
    resident = _nbytes(h_bf16) + _nbytes(w) + _nbytes(b)
    vmem_limit = int(max(2 * (2 * streamed + resident), 32 * 1024 * 1024))

    cost = pl.CostEstimate(
        flops=2 * n_pad * n_pad * f_in + 2 * n_pad * f_in * f_out,
        transcendentals=(2 * n_pad * f_out) if final else 0,
        bytes_accessed=sum(_nbytes(x) for x in args) + n_pad * f_out * 4,
    )

    kernel = functools.partial(_gcn_layer_kernel,
                               apply_mask=mask is not None, final=final)
    return pl.pallas_call(
        kernel,
        out_shape=jax.ShapeDtypeStruct((n_pad, f_out), jnp.float32),
        grid=grid,
        in_specs=in_specs,
        out_specs=out_spec,
        compiler_params=pltpu.CompilerParams(
            dimension_semantics=("parallel",),   # v7x: split row tiles over both TCs
            vmem_limit_bytes=vmem_limit,
        ),
        cost_estimate=cost,
    )(*args)


def normalized_adjacency(edge_index, num_nodes):
    """Dense GCN normalization: D^-1/2 (A + I) D^-1/2, messages flow src -> dst."""
    src, dst = edge_index[0], edge_index[1]
    a = jnp.zeros((num_nodes, num_nodes), jnp.float32).at[dst, src].add(1.0)
    a = a + jnp.eye(num_nodes, dtype=jnp.float32)  # add self loops
    deg = jnp.sum(a, axis=1)
    dinv = jnp.where(deg > 0, 1.0 / jnp.sqrt(deg), 0.0)
    return dinv[:, None] * a * dinv[None, :]


def gcn_net_forward(x, edge_index, params, dropout_p, *, training=True,
                    dropout_rng=None, tm=128):
    w1, b1, w2, b2, w3, b3 = params
    n, f_in = x.shape
    hidden = w1.shape[1]
    num_class = w3.shape[1]

    n_pad = _round_up(max(n, tm), tm)
    fi_pad = _round_up(f_in, LANE)
    fh_pad = _round_up(hidden, LANE)
    fc_pad = _round_up(num_class, LANE)

    def pad2(m, rows, cols):
        m = m.astype(jnp.float32)
        return jnp.pad(m, ((0, rows - m.shape[0]), (0, cols - m.shape[1])))

    # Dense normalized adjacency, zero-padded, stored bf16 (f32 MXU accumulate).
    a = normalized_adjacency(edge_index, n)
    a = jnp.zeros((n_pad, n_pad), jnp.float32).at[:n, :n].set(a).astype(jnp.bfloat16)

    x_p = pad2(x, n_pad, fi_pad).astype(jnp.bfloat16)
    w1_p, b1_p = pad2(w1, fi_pad, fh_pad), pad2(b1, 1, fh_pad)
    w2_p, b2_p = pad2(w2, fh_pad, fh_pad), pad2(b2, 1, fh_pad)
    # Padded class columns: zero weights + NEG_FILL bias => logits ~ -1e30 there,
    # so they contribute nothing to the log_softmax max/sum.
    w3_p = pad2(w3, fh_pad, fc_pad)
    b3_p = jnp.concatenate(
        [b3.astype(jnp.float32),
         jnp.full((1, fc_pad - num_class), NEG_FILL, jnp.float32)], axis=1)

    # Dropout keep-masks, pre-scaled by 1/(1-p): the kernel does a single vmul.
    # TODO(synk): on real HW, pltpu.prng_random_bits inside the kernel would avoid
    # the mask HBM traffic, but it does not lower in interpret mode.
    mask1 = mask2 = None
    if training and dropout_p > 0.0:
        if dropout_rng is None:
            dropout_rng = jax.random.PRNGKey(0)
        k1, k2 = jax.random.split(dropout_rng)
        scale = 1.0 / (1.0 - dropout_p)
        mask1 = jax.random.bernoulli(k1, 1.0 - dropout_p, (n_pad, fh_pad)
                                     ).astype(jnp.float32) * scale
        mask2 = jax.random.bernoulli(k2, 1.0 - dropout_p, (n_pad, fh_pad)
                                     ).astype(jnp.float32) * scale

    h1 = _gcn_layer(a, x_p, w1_p, b1_p, mask1, final=False, tm=tm)
    h2 = _gcn_layer(a, h1.astype(jnp.bfloat16), w2_p, b2_p, mask2, final=False, tm=tm)
    out = _gcn_layer(a, h2.astype(jnp.bfloat16), w3_p, b3_p, None, final=True, tm=tm)
    return out[:n, :num_class]


if __name__ == "__main__":
    # Small, deterministic synthetic problem.
    N, INPUT_DIM, HIDDEN_DIM, NUM_CLASS = 16, 8, 32, 4
    DROPOUT = 0.5
    E = 40

    key = jax.random.PRNGKey(0)
    k = jax.random.split(key, 7)

    x = jax.random.normal(k[0], (N, INPUT_DIM), dtype=jnp.float32)
    src = jax.random.randint(k[1], (E,), 0, N)
    dst = (src + jax.random.randint(k[2], (E,), 1, N)) % N  # no self loops
    # undirected graph: both directions
    edge_index = jnp.stack([jnp.concatenate([src, dst]),
                            jnp.concatenate([dst, src])]).astype(jnp.int32)

    def glorot(kk, shape):
        limit = (6.0 / (shape[0] + shape[1])) ** 0.5
        return jax.random.uniform(kk, shape, jnp.float32, -limit, limit)

    # GCNConv params (weights as [in, out] so layer is x @ W; bias zeros like PyG)
    w1 = glorot(k[3], (INPUT_DIM, HIDDEN_DIM)); b1 = jnp.zeros((1, HIDDEN_DIM), jnp.float32)
    w2 = glorot(k[4], (HIDDEN_DIM, HIDDEN_DIM)); b2 = jnp.zeros((1, HIDDEN_DIM), jnp.float32)
    w3 = glorot(k[5], (HIDDEN_DIM, NUM_CLASS)); b3 = jnp.zeros((1, NUM_CLASS), jnp.float32)

    out = gcn_net_forward(x, edge_index, (w1, b1, w2, b2, w3, b3), DROPOUT,
                          training=True, dropout_rng=k[6])
    jax.block_until_ready(out)

    assert out.shape == (N, NUM_CLASS)
    assert bool(jnp.all(jnp.isfinite(out)))
    # rows of log_softmax must exponentiate-sum to ~1
    assert bool(jnp.allclose(jnp.sum(jnp.exp(out), axis=1), 1.0, atol=1e-4))
    print("KERNEL_OK")
</pallas_src>

<mosaic_0001>
module attributes {stable_mosaic.version = 11 : i64} {
  func.func @_gcn_layer_kernel(%arg0: i32, %arg1: memref<128x128xbf16, #tpu.memory_space<vmem>>, %arg2: memref<128x128xbf16, #tpu.memory_space<vmem>>, %arg3: memref<128x128xf32, #tpu.memory_space<vmem>>, %arg4: memref<1x128xf32, #tpu.memory_space<vmem>>, %arg5: memref<128x128xf32, #tpu.memory_space<vmem>>, %arg6: memref<128x128xf32, #tpu.memory_space<vmem>>) attributes {dimension_semantics = [#tpu.dimension_semantics<parallel>], iteration_bounds = array<i64: 1>, scalar_prefetch = 0 : i64, scratch_operands = 0 : i64, tpu.core_type = #tpu.core_type<tc>, window_params = [{transform_indices = @transform_0, window_bounds = array<i64: 128, 128>}, {pipeline_mode = #tpu.pipeline_mode<synchronous>, transform_indices = @transform_1, window_bounds = array<i64: 128, 128>}, {pipeline_mode = #tpu.pipeline_mode<synchronous>, transform_indices = @transform_2, window_bounds = array<i64: 128, 128>}, {pipeline_mode = #tpu.pipeline_mode<synchronous>, transform_indices = @transform_3, window_bounds = array<i64: 1, 128>}, {transform_indices = @transform_4, window_bounds = array<i64: 128, 128>}, {transform_indices = @transform_5, window_bounds = array<i64: 128, 128>}]} {
    %c0 = arith.constant 0 : index
    %c0_0 = arith.constant 0 : index
    %0 = vector.load %arg1[%c0, %c0_0] : memref<128x128xbf16, #tpu.memory_space<vmem>>, vector<128x128xbf16>
    %c0_1 = arith.constant 0 : index
    %c0_2 = arith.constant 0 : index
    %1 = vector.load %arg2[%c0_1, %c0_2] : memref<128x128xbf16, #tpu.memory_space<vmem>>, vector<128x128xbf16>
    %cst = arith.constant dense<0.000000e+00> : vector<128x128xf32>
    %2 = tpu.matmul %0, %1, %cst {dimension_numbers = #tpu.dot_dimension_numbers<[1], [0], [0], [1], [0, 0, 1, 1], [], []>} : vector<128x128xbf16>, vector<128x128xbf16>, vector<128x128xf32> -> vector<128x128xf32>
    %c0_3 = arith.constant 0 : index
    %c0_4 = arith.constant 0 : index
    %3 = vector.load %arg3[%c0_3, %c0_4] : memref<128x128xf32, #tpu.memory_space<vmem>>, vector<128x128xf32>
    %cst_5 = arith.constant dense<0.000000e+00> : vector<128x128xf32>
    %4 = tpu.matmul %2, %3, %cst_5 {dimension_numbers = #tpu.dot_dimension_numbers<[1], [0], [0], [1], [0, 0, 1, 1], [], []>} : vector<128x128xf32>, vector<128x128xf32>, vector<128x128xf32> -> vector<128x128xf32>
    %c0_6 = arith.constant 0 : index
    %c0_7 = arith.constant 0 : index
    %5 = vector.load %arg4[%c0_6, %c0_7] : memref<1x128xf32, #tpu.memory_space<vmem>>, vector<1x128xf32>
    %6 = vector.broadcast %5 : vector<1x128xf32> to vector<128x128xf32>
    %7 = arith.addf %4, %6 : vector<128x128xf32>
    %cst_8 = arith.constant 0.00999999977 : f32
    %8 = vector.broadcast %cst_8 : f32 to vector<128x128xf32>
    %9 = arith.mulf %8, %7 : vector<128x128xf32>
    %10 = arith.maximumf %7, %9 : vector<128x128xf32>
    %c0_9 = arith.constant 0 : index
    %c0_10 = arith.constant 0 : index
    %11 = vector.load %arg5[%c0_9, %c0_10] : memref<128x128xf32, #tpu.memory_space<vmem>>, vector<128x128xf32>
    %12 = arith.mulf %10, %11 : vector<128x128xf32>
    %c0_11 = arith.constant 0 : index
    %c0_12 = arith.constant 0 : index
    %13 = vector.load %arg6[%c0_11, %c0_12] : memref<128x128xf32, #tpu.memory_space<vmem>>, vector<128x128xf32>
    tpu.vector_store %arg6[%c0_11, %c0_12], %12 {strides = array<i32>} : memref<128x128xf32, #tpu.memory_space<vmem>>, vector<128x128xf32>,
    return
  }
  func.func @transform_0(%arg0: i32) -> (i32, i32) {
    %c0_i32 = arith.constant 0 : i32
    %c0_i32_0 = arith.constant 0 : i32
    return %arg0, %c0_i32 : i32, i32
  }
  func.func @transform_1(%arg0: i32) -> (i32, i32) {
    %c0_i32 = arith.constant 0 : i32
    %c0_i32_0 = arith.constant 0 : i32
    %c0_i32_1 = arith.constant 0 : i32
    return %c0_i32, %c0_i32_0 : i32, i32
  }
  func.func @transform_2(%arg0: i32) -> (i32, i32) {
    %c0_i32 = arith.constant 0 : i32
    %c0_i32_0 = arith.constant 0 : i32
    %c0_i32_1 = arith.constant 0 : i32
    return %c0_i32, %c0_i32_0 : i32, i32
  }
  func.func @transform_3(%arg0: i32) -> (i32, i32) {
    %c0_i32 = arith.constant 0 : i32
    %c0_i32_0 = arith.constant 0 : i32
    %c0_i32_1 = arith.constant 0 : i32
    return %c0_i32, %c0_i32_0 : i32, i32
  }
  func.func @transform_4(%arg0: i32) -> (i32, i32) {
    %c0_i32 = arith.constant 0 : i32
    %c0_i32_0 = arith.constant 0 : i32
    return %arg0, %c0_i32 : i32, i32
  }
  func.func @transform_5(%arg0: i32) -> (i32, i32) {
    %c0_i32 = arith.constant 0 : i32
    %c0_i32_0 = arith.constant 0 : i32
    return %arg0, %c0_i32 : i32, i32
  }
}

</mosaic_0001>

<bundles_post_ra>
// kernel: tpu_custom_call.1
= control target key start
LH: loop header
LB: loop body
LE: loop exit
PB: predicated region body
PF: predicated region fallthrough
CT: control target
= control target key end

     0   :  { %10 = vsyncpa [#allocation3], 0  ;;  %s1033_s0 = inlined_call_operand.hbm [shape: bf16[128,128], index: 0, kind: input, shape index: {}]   ;;  %s1034_s1 = inlined_call_operand.hbm [shape: bf16[128,128], index: 1, kind: input, shape index: {}]   ;;  %s1035_s2 = inlined_call_operand.hbm [shape: f32[128,128], index: 2, kind: input, shape index: {}]   ;;  %s1036_s3 = inlined_call_operand.vmem [shape: f32[1,128], index: 3, kind: input, shape index: {}]   ;;  %s1037_s4 = inlined_call_operand.hbm [shape: f32[128,128], index: 4, kind: input, shape index: {}]   ;;  %s1038_s5 = inlined_call_operand.hbm [shape: f32[128,128], index: 5, kind: output, shape index: {}]  }
   0x1   :  { %11 = vsyncpa [#allocation6], 0 }
   0x2   :  { %12 = vsyncpa [#allocation9], 0 }
   0x3   :  { %13 = vsyncpa [#allocation4], 0  ;;  %s897_s18 = smov [#allocation5]   ;;  %s898_s20 = smov [#allocation2]  }
   0x4   :  { %s31_s19 = sshll.u32 %s897_s18, 4  ;;  %s19_s21 = sshll.u32 %s898_s20, 4  ;;  %s32_s19 = int_to_ptr.vmem [resolvable:$true] %s31_s19  ;;  %s936_s21 = int_to_ptr.vmem [resolvable:$true] %s19_s21 }
   0x5   :  { %s779_s24 = scalar_lea.hbm %s1034_s1, 1024 }
   0x6   :  { %p780_p0 = scmp.ne.s32.totalorder %s1034_s1, %s779_s24  ;;  %p783_p1 = scmp.lt.u32.totalorder %s779_s24, %s1034_s1 }
   0x8   :  { %p785_p2 = pnand %p783_p1, %p780_p0 }
   0xa   :  { %788 = shalt.err (!%p785_p2)
}
   0xb   :  { %s789_s29 = scalar_lea.vmem %s32_s19, 1024  ;;  %p794_p4 = scmp.lt.s32.totalorder %s32_s19, %s32_s19 }
   0xc   :  { %p790_p3 = scmp.ne.s32.totalorder %s32_s19, %s789_s29  ;;  %p795_p5 = scmp.lt.s32.totalorder %s789_s29, %s789_s29 }
   0xe   :  { %p796_p6 = por %p795_p5, %p794_p4 }
  0x10   :  { %p797_p7 = pnand %p796_p6, %p790_p3 }
  0x12   :  { %800 = shalt.err (!%p797_p7)
}
  0x13   :  { %s899_s30 = smov 64   ;;  %s900_s6 = smov 4  }
  0x14   :  { %37 = dma.hbm_to_vmem [thread:$0]  %s1034_s1, 1024, %s32_s19, [#allocation6], %s899_s30, %s899_s30, %s900_s6  }
  0x15   :  { %s801_s11 = scalar_lea.hbm %s1033_s0, 1024 }
  0x16   :  { %p802_p8 = scmp.ne.s32.totalorder %s1033_s0, %s801_s11  ;;  %p805_p9 = scmp.lt.u32.totalorder %s801_s11, %s1033_s0 }
  0x18   :  { %p807_p10 = pnand %p805_p9, %p802_p8 }
  0x1a   :  { %810 = shalt.err (!%p807_p10)
}
  0x1b   :  { %s811_s16 = scalar_lea.vmem %s936_s21, 1024  ;;  %p816_p12 = scmp.lt.s32.totalorder %s936_s21, %s936_s21 }
  0x1c   :  { %p812_p11 = scmp.ne.s32.totalorder %s936_s21, %s811_s16  ;;  %p817_p13 = scmp.lt.s32.totalorder %s811_s16, %s811_s16 }
  0x1e   :  { %p818_p0 = por %p817_p13, %p816_p12 }
  0x20   :  { %p819_p1 = pnand %p818_p0, %p812_p11 }
  0x22   :  { %822 = shalt.err (!%p819_p1)
}
  0x23   :  { %25 = dma.hbm_to_vmem [thread:$0]  %s1033_s0, 1024, %s936_s21, [#allocation3], %s899_s30, %s899_s30, %s900_s6  }
  0x24   :  { %s901_s18 = smov [#allocation7]   ;;  %s823_s23 = scalar_lea.hbm %s1035_s2, 2048 }
  0x25   :  { %s43_s19 = sshll.u32 %s901_s18, 4  ;;  %p824_p2 = scmp.ne.s32.totalorder %s1035_s2, %s823_s23  ;;  %s44_s19 = int_to_ptr.vmem [resolvable:$true] %s43_s19 }
  0x26   :  { %p827_p3 = scmp.lt.u32.totalorder %s823_s23, %s1035_s2 }
  0x28   :  { %p829_p4 = pnand %p827_p3, %p824_p2 }
  0x2a   :  { %832 = shalt.err (!%p829_p4)
}
  0x2b   :  { %s833_s28 = scalar_lea.vmem %s44_s19, 2048  ;;  %p838_p6 = scmp.lt.s32.totalorder %s44_s19, %s44_s19 }
  0x2c   :  { %p834_p5 = scmp.ne.s32.totalorder %s44_s19, %s833_s28  ;;  %p839_p7 = scmp.lt.s32.totalorder %s833_s28, %s833_s28 }
  0x2e   :  { %p840_p8 = por %p839_p7, %p838_p6 }
  0x30   :  { %p841_p9 = pnand %p840_p8, %p834_p5 }
  0x32   :  { %844 = shalt.err (!%p841_p9)
}
  0x33   :  { %s902_s0 = smov 128   ;;  %s903_s21 = smov 8  }
  0x34   :  { %49 = dma.hbm_to_vmem [thread:$0]  %s1035_s2, 2048, %s44_s19, [#allocation6], %s902_s0, %s902_s0, %s903_s21  }
  0x35   :  { %s904_s6 = smov [#allocation8]   ;;  %s845_s10 = scalar_lea.hbm %s1037_s4, 2048 }
  0x36   :  { %s57_s7 = sshll.u32 %s904_s6, 4  ;;  %p846_p10 = scmp.ne.s32.totalorder %s1037_s4, %s845_s10  ;;  %s58_s7 = int_to_ptr.vmem [resolvable:$true] %s57_s7 }
  0x37   :  { %p849_p11 = scmp.lt.u32.totalorder %s845_s10, %s1037_s4 }
  0x39   :  { %p851_p12 = pnand %p849_p11, %p846_p10 }
  0x3b   :  { %854 = shalt.err (!%p851_p12)
}
  0x3c   :  { %s855_s15 = scalar_lea.vmem %s58_s7, 2048  ;;  %p860_p0 = scmp.lt.s32.totalorder %s58_s7, %s58_s7 }
  0x3d   :  { %p856_p13 = scmp.ne.s32.totalorder %s58_s7, %s855_s15  ;;  %p861_p1 = scmp.lt.s32.totalorder %s855_s15, %s855_s15 }
  0x3f   :  { %p862_p2 = por %p861_p1, %p860_p0 }
  0x41   :  { %p863_p3 = pnand %p862_p2, %p856_p13 }
  0x43   :  { %866 = shalt.err (!%p863_p3)
}
  0x44   :  { %63 = dma.hbm_to_vmem [thread:$0]  %s1037_s4, 2048, %s58_s7, [#allocation9], %s902_s0, %s902_s0, %s903_s21  }
  0x45   :  { %889 = dma.done.wait [#allocation3], 1024  }
  0x46   :  { %890 = vsyncadd [#allocation3], 4294966272 }
  0x47   :  { %891 = dma.done.wait [#allocation6], 3072  }
  0x48   :  { %892 = vsyncadd [#allocation6], 4294964224 }
  0x49   :  { %893 = dma.done.wait [#allocation9], 2048  }
  0x4a   :  { %894 = vsyncadd [#allocation9], 4294965248  ;;  %v763_v0 = vld [vmem:[#allocation5] sm:$0xff]   ;;  %v764_v1 = vld [vmem:[#allocation5 + $0x8] sm:$0xff]  }
  0x4b   :  { %634 = vmatprep.subr.bf16.mxu0 %v763_v0  ;;  %v765_v2 = vld [vmem:[#allocation5 + $0x10] sm:$0xff]   ;;  %v766_v3 = vld [vmem:[#allocation5 + $0x18] sm:$0xff]   ;;  %v771_v4 = vld [vmem:[#allocation2] sm:$0xff]  }
  0x4c   :  { %635 = vmatpush3.bf16.msra.mxu0 %v763_v0  ;;  %650 = vmatprep.mubr.bf16.mxu0 %v771_v4  ;;  %v767_v5 = vld [vmem:[#allocation5 + $0x20] sm:$0xff]   ;;  %v768_v6 = vld [vmem:[#allocation5 + $0x28] sm:$0xff]   ;;  %v304_v9 = vld [vmem:[#allocation7 + $0x10] sm:$0xff] }
  0x4d   :  { %636 = vmatprep.subr.bf16.mxu0 %v764_v1  ;;  %v302_v7 = vld [vmem:[#allocation7] sm:$0xff]  ;;  %v303_v8 = vld [vmem:[#allocation7 + $0x8] sm:$0xff]  ;;  %v305_v11 = vld [vmem:[#allocation7 + $0x18] sm:$0xff] }
  0x4e   :  { %v722_v10 = vpack.c.bf16 %v303_v8, %v302_v7  ;;  %v726_v12 = vpack.c.bf16 %v305_v11, %v304_v9  ;;  %v306_v13 = vld [vmem:[#allocation7 + $0x20] sm:$0xff]  ;;  %v307_v14 = vld [vmem:[#allocation7 + $0x28] sm:$0xff]  ;;  %v769_v15 = vld [vmem:[#allocation5 + $0x30] sm:$0xff]  }
  0x4f   :  { %v730_v16 = vpack.c.bf16 %v307_v14, %v306_v13  ;;  %v308_v17 = vld [vmem:[#allocation7 + $0x30] sm:$0xff]  ;;  %v309_v18 = vld [vmem:[#allocation7 + $0x38] sm:$0xff]  ;;  %v310_v21 = vld [vmem:[#allocation7 + $0x40] sm:$0xff] }
  0x50   :  { %637 = vmatpush3.bf16.msra.mxu0 %v764_v1  ;;  %723 = vmatprep.subr.bf16.mxu1 %v722_v10  ;;  %v770_v19 = vld [vmem:[#allocation5 + $0x38] sm:$0xff]   ;;  %v734_v20 = vpack.c.bf16 %v309_v18, %v308_v17  ;;  %v311_v22 = vld [vmem:[#allocation7 + $0x48] sm:$0xff]  ;;  %v312_v25 = vld [vmem:[#allocation7 + $0x50] sm:$0xff] }
  0x51   :  { %638 = vmatprep.subr.bf16.mxu0 %v765_v2  ;;  %725 = vmatpush3.bf16.msra.mxu1 %v722_v10  ;;  %v738_v23 = vpack.c.bf16 %v311_v22, %v310_v21  ;;  %v772_v24 = vld [vmem:[#allocation2 + $0x8] sm:$0xff]   ;;  %v313_v26 = vld [vmem:[#allocation7 + $0x58] sm:$0xff]  ;;  %v773_v27 = vld [vmem:[#allocation2 + $0x10] sm:$0xff]  }
  0x52   :  { %727 = vmatprep.subr.bf16.mxu1 %v726_v12  ;;  %v742_v28 = vpack.c.bf16 %v313_v26, %v312_v25  ;;  %v314_v29 = vld [vmem:[#allocation7 + $0x60] sm:$0xff]  ;;  %v315_v30 = vld [vmem:[#allocation7 + $0x68] sm:$0xff]  ;;  %v774_v32 = vld [vmem:[#allocation2 + $0x18] sm:$0xff]  }
  0x53   :  { %v746_v31 = vpack.c.bf16 %v315_v30, %v314_v29  ;;  %v775_v33 = vld [vmem:[#allocation2 + $0x20] sm:$0xff]   ;;  %v776_v34 = vld [vmem:[#allocation2 + $0x28] sm:$0xff]   ;;  %v777_v35 = vld [vmem:[#allocation2 + $0x30] sm:$0xff]  }
  0x54   :  { %639 = vmatpush3.bf16.msra.mxu0 %v765_v2  ;;  %v778_v36 = vld [vmem:[#allocation2 + $0x38] sm:$0xff]   ;;  %v316_v37 = vld [vmem:[#allocation7 + $0x70] sm:$0xff]  ;;  %v1000_v56 = vld [vmem:[%s1036_s3] ss:$0 sm:$0xff]  ;;  %s905_s3 = smov [#allocation10]  }
  0x55   :  { %640 = vmatprep.subr.bf16.mxu0 %v766_v3  ;;  %729 = vmatpush3.bf16.msra.mxu1 %v726_v12  ;;  %v317_v38 = vld [vmem:[#allocation7 + $0x78] sm:$0xff]  ;;  %v503_v62 = vld [vmem:[#allocation8 + $0x8] sm:$0xff]  ;;  %v502_v2 = vld [vmem:[#allocation8] sm:$0xff]  ;;  %s555_s17 = sshll.u32 %s905_s3, 4  ;;  %s556_s17 = int_to_ptr.vmem [resolvable:$true] %s555_s17 }
  0x56   :  { %731 = vmatprep.subr.bf16.mxu1 %v730_v16  ;;  %v750_v39 = vpack.c.bf16 %v317_v38, %v316_v37  ;;  %v505_v10 = vld [vmem:[#allocation8 + $0x18] sm:$0xff]  ;;  %v504_v14 = vld [vmem:[#allocation8 + $0x10] sm:$0xff]  ;;  %v507_v22 = vld [vmem:[#allocation8 + $0x28] sm:$0xff]  ;;  %s867_s18 = scalar_lea.vmem %s556_s17, 2048  ;;  %p872_p5 = scmp.lt.s32.totalorder %s556_s17, %s556_s17 }
  0x57   :  { %v506_v26 = vld [vmem:[#allocation8 + $0x20] sm:$0xff]  ;;  %v508_v38 = vld [vmem:[#allocation8 + $0x30] sm:$0xff]  ;;  %p868_p4 = scmp.ne.s32.totalorder %s556_s17, %s867_s18  ;;  %p873_p6 = scmp.lt.s32.totalorder %s867_s18, %s867_s18 }
  0x58   :  { %641 = vmatpush3.bf16.msra.mxu0 %v766_v3 }
  0x59   :  { %642 = vmatprep.subr.bf16.mxu0 %v767_v5  ;;  %733 = vmatpush3.bf16.msra.mxu1 %v730_v16  ;;  %p874_p7 = por %p873_p6, %p872_p5 }
  0x5a   :  { %735 = vmatprep.subr.bf16.mxu1 %v734_v20 }
  0x5b   :  { %p875_p8 = pnand %p874_p7, %p868_p4 }
  0x5c   :  { %643 = vmatpush3.bf16.msra.mxu0 %v767_v5 }
  0x5d   :  { %644 = vmatprep.subr.bf16.mxu0 %v768_v6  ;;  %737 = vmatpush3.bf16.msra.mxu1 %v734_v20 }
  0x5e   :  { %739 = vmatprep.subr.bf16.mxu1 %v738_v23 }
  0x60   :  { %645 = vmatpush3.bf16.msra.mxu0 %v768_v6 }
  0x61   :  { %646 = vmatprep.subr.bf16.mxu0 %v769_v15  ;;  %741 = vmatpush3.bf16.msra.mxu1 %v738_v23 }
  0x62   :  { %743 = vmatprep.subr.bf16.mxu1 %v742_v28 }
  0x64   :  { %647 = vmatpush3.bf16.msra.mxu0 %v769_v15 }
  0x65   :  { %648 = vmatprep.subr.bf16.mxu0 %v770_v19  ;;  %745 = vmatpush3.bf16.msra.mxu1 %v742_v28 }
  0x66   :  { %747 = vmatprep.subr.bf16.mxu1 %v746_v31 }
  0x68   :  { %649 = vmatpush3.bf16.msra.mxu0 %v770_v19 }
  0x69   :  { %749 = vmatpush3.bf16.msra.mxu1 %v746_v31 }
  0x6a   :  { %751 = vmatprep.subr.bf16.mxu1 %v750_v39 }
  0x6b   :  { %651 = vmatmul.mubr.bf16.vlgmr.msra.gmra.mrb[0].mxu0 %v772_v24 }
  0x6c   :  { %654 = vmatprep.mubr.bf16.mxu0 %v773_v27 }
  0x6d   :  { %753 = vmatpush3.bf16.msra.mxu1 %v750_v39 }
  0x73   :  { %655 = vmatmul.mubr.bf16.gmra.mrb[4].mxu0 %v774_v32 }
  0x74   :  { %658 = vmatprep.mubr.bf16.mxu0 %v775_v33 }
  0x7b   :  { %659 = vmatmul.mubr.bf16.gmra.mrb[8].mxu0 %v776_v34  ;;  %v509_v34 = vld [vmem:[#allocation8 + $0x38] sm:$0xff] }
  0x7c   :  { %662 = vmatprep.mubr.bf16.mxu0 %v777_v35 }
  0x83   :  { %663 = vmatmul.mubr.bf16.gmra.mrb[12].mxu0 %v778_v36 }
 0x13e   :  { %v652_v40 = vpop.f32.mrb[0].mxu0 }
 0x13f   :  { %v239_v41 = vpop.f32.mrb[1].mxu0 }
 0x140   :  { %v653_v42 = vpop.f32.mrb[2].mxu0  ;;  %698 = vmatprep.mubr.f32.mxu1 %v239_v41 }
 0x141   :  { %v242_v43 = vpop.f32.mrb[3].mxu0 }
 0x142   :  { %699 = vmatmul.mubr.f32.vlgmr.msra.gmra.mrb[0].mxu1 %v242_v43 }
 0x143   :  { %701 = vmatprep.mubr.f32.mxu1 %v652_v40 }
 0x146   :  { %v656_v44 = vpop.f32.mrb[4].mxu0  ;;  %702 = vmatmul.mubr.f32.gmra.mrb[2].mxu1 %v653_v42 }
 0x147   :  { %v255_v45 = vpop.f32.mrb[5].mxu0 }
 0x148   :  { %v657_v46 = vpop.f32.mrb[6].mxu0  ;;  %704 = vmatprep.mubr.f32.mxu1 %v255_v45 }
 0x149   :  { %v258_v47 = vpop.f32.mrb[7].mxu0 }
 0x14a   :  { %705 = vmatmul.mubr.f32.gmra.mrb[4].mxu1 %v258_v47 }
 0x14b   :  { %707 = vmatprep.mubr.f32.mxu1 %v656_v44 }
 0x14e   :  { %v660_v48 = vpop.f32.mrb[8].mxu0  ;;  %708 = vmatmul.mubr.f32.gmra.mrb[6].mxu1 %v657_v46  ;;  %v511_v46 = vld [vmem:[#allocation8 + $0x48] sm:$0xff] }
 0x14f   :  { %v271_v49 = vpop.f32.mrb[9].mxu0 }
 0x150   :  { %v661_v50 = vpop.f32.mrb[10].mxu0  ;;  %710 = vmatprep.mubr.f32.mxu1 %v271_v49 }
 0x151   :  { %v274_v51 = vpop.f32.mrb[11].mxu0 }
 0x152   :  { %711 = vmatmul.mubr.f32.gmra.mrb[8].mxu1 %v274_v51 }
 0x153   :  { %713 = vmatprep.mubr.f32.mxu1 %v660_v48 }
 0x156   :  { %v664_v52 = vpop.f32.mrb[12].mxu0  ;;  %714 = vmatmul.mubr.f32.gmra.mrb[10].mxu1 %v661_v50  ;;  %v510_v50 = vld [vmem:[#allocation8 + $0x40] sm:$0xff] }
 0x157   :  { %v287_v53 = vpop.f32.mrb[13].mxu0 }
 0x158   :  { %v665_v54 = vpop.f32.mrb[14].mxu0  ;;  %716 = vmatprep.mubr.f32.mxu1 %v287_v53 }
 0x159   :  { %v290_v55 = vpop.f32.mrb[15].mxu0 }
 0x15a   :  { %717 = vmatmul.mubr.f32.gmra.mrb[12].mxu1 %v290_v55 }
 0x15b   :  { %719 = vmatprep.mubr.f32.mxu1 %v664_v52 }
 0x15e   :  { %720 = vmatmul.mubr.f32.gmra.mrb[14].mxu1 %v665_v54 }
 0x215   :  { %v700_v57 = vpop.f32.mrb[0].mxu1 }
 0x216   :  { %v397_v58 = vadd.f32 %v700_v57, %v1000_v56  ;;  %v391_v59 = vpop.f32.mrb[1].mxu1 }
 0x217   :  { %v392_v60 = vadd.f32 %v1000_v56, %v391_v59  ;;  %v513_v59 = vld [vmem:[#allocation8 + $0x58] sm:$0xff] }
 0x218   :  { %v471_v61 = vmul.f32 0.01, %v397_v58 }
 0x219   :  { %v470_v63 = vmul.f32 0.01, %v392_v60  ;;  %v703_v0 = vpop.f32.mrb[2].mxu1 }
 0x21a   :  { %v487_v1 = vmax.f32 %v397_v58, %v471_v61  ;;  %v407_v3 = vadd.f32 %v703_v0, %v1000_v56  ;;  %v401_v4 = vpop.f32.mrb[3].mxu1 }
 0x21b   :  { %v486_v5 = vmax.f32 %v392_v60, %v470_v63  ;;  %v402_v6 = vadd.f32 %v1000_v56, %v401_v4  ;;  %v512_v63 = vld [vmem:[#allocation8 + $0x50] sm:$0xff] }
 0x21c   :  { %v519_v7 = vmul.f32 %v503_v62, %v487_v1  ;;  %v473_v8 = vmul.f32 0.01, %v407_v3 }
 0x21d   :  { %v518_v9 = vmul.f32 %v502_v2, %v486_v5  ;;  %v472_v11 = vmul.f32 0.01, %v402_v6  ;;  %v706_v12 = vpop.f32.mrb[4].mxu1 }
 0x21e   :  { %535 = vst [vmem:[#allocation10 + $0x8] sm:$0xff] %v519_v7  ;;  %v489_v13 = vmax.f32 %v407_v3, %v473_v8  ;;  %v417_v15 = vadd.f32 %v706_v12, %v1000_v56  ;;  %v411_v16 = vpop.f32.mrb[5].mxu1  ;;  %v515_v7 = vld [vmem:[#allocation8 + $0x68] sm:$0xff] }
 0x21f   :  { %534 = vst [vmem:[#allocation10] sm:$0xff] %v518_v9  ;;  %v488_v17 = vmax.f32 %v402_v6, %v472_v11  ;;  %v412_v18 = vadd.f32 %v1000_v56, %v411_v16  ;;  %v514_v11 = vld [vmem:[#allocation8 + $0x60] sm:$0xff] }
 0x220   :  { %v521_v19 = vmul.f32 %v505_v10, %v489_v13  ;;  %v475_v20 = vmul.f32 0.01, %v417_v15 }
 0x221   :  { %v520_v21 = vmul.f32 %v504_v14, %v488_v17  ;;  %v474_v23 = vmul.f32 0.01, %v412_v18  ;;  %v709_v24 = vpop.f32.mrb[6].mxu1 }
 0x222   :  { %537 = vst [vmem:[#allocation10 + $0x18] sm:$0xff] %v521_v19  ;;  %v491_v25 = vmax.f32 %v417_v15, %v475_v20  ;;  %v427_v27 = vadd.f32 %v709_v24, %v1000_v56  ;;  %v421_v28 = vpop.f32.mrb[7].mxu1  ;;  %v517_v19 = vld [vmem:[#allocation8 + $0x78] sm:$0xff] }
 0x223   :  { %536 = vst [vmem:[#allocation10 + $0x10] sm:$0xff] %v520_v21  ;;  %v490_v29 = vmax.f32 %v412_v18, %v474_v23  ;;  %v422_v30 = vadd.f32 %v1000_v56, %v421_v28 }
 0x224   :  { %v523_v31 = vmul.f32 %v507_v22, %v491_v25  ;;  %v477_v32 = vmul.f32 0.01, %v427_v27  ;;  %v516_v22 = vld [vmem:[#allocation8 + $0x70] sm:$0xff] }
 0x225   :  { %v522_v33 = vmul.f32 %v506_v26, %v490_v29  ;;  %v476_v35 = vmul.f32 0.01, %v422_v30  ;;  %v712_v36 = vpop.f32.mrb[8].mxu1 }
 0x226   :  { %539 = vst [vmem:[#allocation10 + $0x28] sm:$0xff] %v523_v31  ;;  %v493_v37 = vmax.f32 %v427_v27, %v477_v32  ;;  %v437_v39 = vadd.f32 %v712_v36, %v1000_v56  ;;  %v431_v40 = vpop.f32.mrb[9].mxu1 }
 0x227   :  { %538 = vst [vmem:[#allocation10 + $0x20] sm:$0xff] %v522_v33  ;;  %v492_v41 = vmax.f32 %v422_v30, %v476_v35  ;;  %v432_v42 = vadd.f32 %v1000_v56, %v431_v40 }
 0x228   :  { %v525_v43 = vmul.f32 %v509_v34, %v493_v37  ;;  %v479_v44 = vmul.f32 0.01, %v437_v39 }
 0x229   :  { %v524_v45 = vmul.f32 %v508_v38, %v492_v41  ;;  %v478_v47 = vmul.f32 0.01, %v432_v42  ;;  %v715_v48 = vpop.f32.mrb[10].mxu1 }
 0x22a   :  { %541 = vst [vmem:[#allocation10 + $0x38] sm:$0xff] %v525_v43  ;;  %v495_v49 = vmax.f32 %v437_v39, %v479_v44  ;;  %v447_v51 = vadd.f32 %v715_v48, %v1000_v56  ;;  %v441_v52 = vpop.f32.mrb[11].mxu1 }
 0x22b   :  { %540 = vst [vmem:[#allocation10 + $0x30] sm:$0xff] %v524_v45  ;;  %v494_v53 = vmax.f32 %v432_v42, %v478_v47  ;;  %v442_v54 = vadd.f32 %v1000_v56, %v441_v52 }
 0x22c   :  { %v527_v55 = vmul.f32 %v511_v46, %v495_v49  ;;  %v481_v57 = vmul.f32 0.01, %v447_v51 }
 0x22d   :  { %v526_v58 = vmul.f32 %v510_v50, %v494_v53  ;;  %v480_v60 = vmul.f32 0.01, %v442_v54  ;;  %v718_v61 = vpop.f32.mrb[12].mxu1 }
 0x22e   :  { %543 = vst [vmem:[#allocation10 + $0x48] sm:$0xff] %v527_v55  ;;  %v497_v62 = vmax.f32 %v447_v51, %v481_v57  ;;  %v457_v0 = vadd.f32 %v718_v61, %v1000_v56  ;;  %v451_v1 = vpop.f32.mrb[13].mxu1 }
 0x22f   :  { %542 = vst [vmem:[#allocation10 + $0x40] sm:$0xff] %v526_v58  ;;  %v496_v2 = vmax.f32 %v442_v54, %v480_v60  ;;  %v452_v3 = vadd.f32 %v1000_v56, %v451_v1 }
 0x230   :  { %v529_v4 = vmul.f32 %v513_v59, %v497_v62  ;;  %v483_v5 = vmul.f32 0.01, %v457_v0 }
 0x231   :  { %v528_v6 = vmul.f32 %v512_v63, %v496_v2  ;;  %v482_v8 = vmul.f32 0.01, %v452_v3  ;;  %v721_v9 = vpop.f32.mrb[14].mxu1 }
 0x232   :  { %545 = vst [vmem:[#allocation10 + $0x58] sm:$0xff] %v529_v4  ;;  %v499_v10 = vmax.f32 %v457_v0, %v483_v5  ;;  %v467_v12 = vadd.f32 %v721_v9, %v1000_v56  ;;  %v461_v13 = vpop.f32.mrb[15].mxu1 }
 0x233   :  { %544 = vst [vmem:[#allocation10 + $0x50] sm:$0xff] %v528_v6  ;;  %v498_v14 = vmax.f32 %v452_v3, %v482_v8  ;;  %v462_v15 = vadd.f32 %v1000_v56, %v461_v13 }
 0x234   :  { %v531_v16 = vmul.f32 %v515_v7, %v499_v10  ;;  %v485_v17 = vmul.f32 0.01, %v467_v12 }
 0x235   :  { %v530_v18 = vmul.f32 %v514_v11, %v498_v14  ;;  %v484_v20 = vmul.f32 0.01, %v462_v15 }
 0x236   :  { %547 = vst [vmem:[#allocation10 + $0x68] sm:$0xff] %v531_v16  ;;  %v501_v21 = vmax.f32 %v467_v12, %v485_v17 }
 0x237   :  { %546 = vst [vmem:[#allocation10 + $0x60] sm:$0xff] %v530_v18  ;;  %v500_v23 = vmax.f32 %v462_v15, %v484_v20 }
 0x238   :  { %v533_v24 = vmul.f32 %v517_v19, %v501_v21 }
 0x239   :  { %v532_v25 = vmul.f32 %v516_v22, %v500_v23 }
 0x23a   :  { %549 = vst [vmem:[#allocation10 + $0x78] sm:$0xff] %v533_v24 }
 0x23b   :  { %548 = vst [vmem:[#allocation10 + $0x70] sm:$0xff] %v532_v25 }
 0x23c   :  { %878 = shalt.err (!%p875_p8)
}
 0x23d   :  { %s879_s22 = scalar_lea.hbm %s1038_s5, 2048 }
 0x23e   :  { %p880_p9 = scmp.ne.s32.totalorder %s1038_s5, %s879_s22  ;;  %p883_p10 = scmp.lt.u32.totalorder %s879_s22, %s1038_s5 }
 0x240   :  { %p885_p11 = pnand %p883_p10, %p880_p9 }
 0x242   :  { %888 = shalt.err (!%p885_p11)
}
 0x243   :  { %561 = dma.vmem_to_hbm [thread:$0]  %s556_s17, 2048, %s1038_s5, [#allocation4], %s902_s0, %s902_s0, %s903_s21  }
 0x244   :  { %895 = dma.done.wait [#allocation4], 2048  }
 0x245   :  { %896 = vsyncadd [#allocation4], 4294965248 }
 0x246   :  { %565 = vsyncpa [#allocation3], 1 }
 0x247   :  { %566 = vsyncpa [#allocation6], 1 }
 0x248   :  { %567 = vsyncpa [#allocation9], 1 }
 0x249   :  { %568 = vsyncpa [#allocation4], 1 }

</bundles_post_ra>
